<compile_context>
chip_gen: v6e
topology: v6e:2x2x1
jax: 0.10.0
libtpu: 0.0.40
codegen_flags: <defaults>
</compile_context>

<pallas_src>
import jax
import jax.numpy as jnp
from jax.experimental import pallas as pl
from jax.experimental.pallas import tpu as pltpu


def _img_grad(y):
    """Circular forward-difference image gradients (pure-JAX reference helper).

    TODO(synk): `img_grad` is not defined in the reference file; we assume the
    standard L0-smoothing convention grad = roll(-1) - identity with circular
    boundary, along W (x-direction) and H (y-direction).
    """
    gx = jnp.roll(y, shift=-1, axis=3) - y  # d/dx (along W)
    gy = jnp.roll(y, shift=-1, axis=2) - y  # d/dy (along H)
    return gx, gy


def _circ_shift_m1(a, axis):
    """out[i] = a[i+1] (circular) along `axis` of a 2-D tile.

    Implemented as a single XLU rotation: roll by (n-1) == roll by -1.
    """
    n = a.shape[axis]
    return pltpu.roll(a, shift=n - 1, axis=axis)


def _l0_loss_kernel(x_ref, y_ref, out_ref):
    # x_ref: (10, H, W) for the current batch element (batch dim squeezed)
    # y_ref: (3, H, W)
    # out_ref: (3, 8, 128) lane-dense partial tile
    f32 = jnp.float32
    H, W = y_ref.shape[1], y_ref.shape[2]

    sq1 = jnp.zeros((H, W), f32)   # sum_c (image_c - y_c)^2
    sq3 = jnp.zeros((H, W), f32)   # sum_c (ygx_c - xgx_c)^2 + (ygy_c - xgy_c)^2
    hv = jnp.zeros((H, W), f32)    # sum_c (xgx_c + xgy_c)

    # Static unroll over the 3 RGB channels; channel indexing hits the leading
    # (untiled) axis of the VMEM block, so each slab load is a plain vld.
    for c in range(3):
        img_c = x_ref[c].astype(f32)
        xgx_c = x_ref[3 + c].astype(f32)
        xgy_c = x_ref[6 + c].astype(f32)
        y_c = y_ref[c].astype(f32)

        # circular forward differences via single XLU rotations
        ygx_c = _circ_shift_m1(y_c, axis=1) - y_c   # d/dx (along W, lane axis)
        ygy_c = _circ_shift_m1(y_c, axis=0) - y_c   # d/dy (along H, sublane axis)

        d = img_c - y_c
        sq1 = sq1 + d * d

        dgx = ygx_c - xgx_c
        dgy = ygy_c - xgy_c
        sq3 = sq3 + dgx * dgx + dgy * dgy

        hv = hv + xgx_c + xgy_c

    lam = x_ref[9].astype(f32)     # lambda map, (H, W)

    # One cross-lane reduction per quantity for this batch element.
    s1 = jnp.sum(sq1)
    s3 = jnp.sum(sq3)
    cnt = jnp.sum((hv != 0.0).astype(f32))        # torch.nonzero(...).size()[0]
    p2 = cnt * (jnp.sum(lam) / (H * W))           # C_b * mean(lambda_b)

    # Lane-dense, unmasked (8,128) stores of the three partials.
    out_ref[0] = jnp.full((8, 128), s1, dtype=f32)
    out_ref[1] = jnp.full((8, 128), s3, dtype=f32)
    out_ref[2] = jnp.full((8, 128), p2, dtype=f32)


def l0_loss(x, y, beta):
    """x: (B, 10, H, W) float32, y: (B, 3, H, W) float32, beta: python scalar."""
    B, C, H, W = x.shape
    assert C == 10 and y.shape == (B, 3, H, W)

    partials = pl.pallas_call(
        _l0_loss_kernel,
        out_shape=jax.ShapeDtypeStruct((B, 3, 8, 128), jnp.float32),
        grid=(B,),
        in_specs=[
            # x passed whole; one batch element per grid step (batch squeezed).
            pl.BlockSpec((None, 10, H, W), lambda b: (b, 0, 0, 0)),
            pl.BlockSpec((None, 3, H, W), lambda b: (b, 0, 0, 0)),
        ],
        out_specs=pl.BlockSpec((None, 3, 8, 128), lambda b: (b, 0, 0, 0)),
        compiler_params=pltpu.CompilerParams(
            # Batch axis is independent -> shard across v7x's 2 TensorCores.
            dimension_semantics=("parallel",),
            # Explicit budget that is safe on v7x's 64 MiB VMEM as well.
            vmem_limit_bytes=32 * 1024 * 1024,
        ),
    )(x, y)

    vals = partials[:, :, 0, 0]                   # (B, 3)
    n_elem = B * 3 * H * W
    loss1 = jnp.sum(vals[:, 0]) / n_elem
    loss3 = (2.0 * beta) * jnp.sum(vals[:, 1]) / n_elem   # beta hoisted out of the mean
    loss2 = jnp.sum(vals[:, 2])
    return loss1 + loss2 + loss3


def l0_loss_ref(x, y, beta):
    """Pure-JAX reference mirroring the PyTorch forward exactly."""
    image = x[:, 0:3]
    xgx = x[:, 3:6]
    xgy = x[:, 6:9]
    lambd = x[:, 9:10]
    loss1 = jnp.mean((image - y) ** 2)
    ygx, ygy = _img_grad(y)
    beta2 = beta * 2.0
    h = xgx + xgy
    h = h[:, 0:1] + h[:, 1:2] + h[:, 2:3]
    loss2_map = lambd[0] * jnp.sum(h[0] != 0).astype(jnp.float32)
    for b in range(1, x.shape[0]):
        loss2_map = loss2_map + lambd[b] * jnp.sum(h[b] != 0).astype(jnp.float32)
    loss2 = jnp.mean(loss2_map)
    loss3 = jnp.mean(beta2 * ((ygx - xgx) ** 2 + (ygy - xgy) ** 2))
    return loss1 + loss2 + loss3


if __name__ == "__main__":
    key = jax.random.PRNGKey(0)
    kx, ky = jax.random.split(key)
    B, H, W = 2, 16, 16
    x = jax.random.normal(kx, (B, 10, H, W), dtype=jnp.float32)
    y = jax.random.normal(ky, (B, 3, H, W), dtype=jnp.float32)
    beta = 0.5

    out = l0_loss(x, y, beta)
    out = jax.block_until_ready(out)

    ref = l0_loss_ref(x, y, beta)
    assert jnp.allclose(out, ref, rtol=1e-4, atol=1e-4), (out, ref)
    print("KERNEL_OK")
</pallas_src>

<mosaic_0001>
module attributes {stable_mosaic.version = 11 : i64} {
  func.func @_l0_loss_kernel(%arg0: i32, %arg1: memref<1x10x16x16xf32, #tpu.memory_space<vmem>>, %arg2: memref<1x3x16x16xf32, #tpu.memory_space<vmem>>, %arg3: memref<1x3x8x128xf32, #tpu.memory_space<vmem>>) attributes {dimension_semantics = [#tpu.dimension_semantics<parallel>], iteration_bounds = array<i64: 2>, scalar_prefetch = 0 : i64, scratch_operands = 0 : i64, tpu.core_type = #tpu.core_type<tc>, window_params = [{transform_indices = @transform_0, window_bounds = array<i64: 1, 10, 16, 16>}, {transform_indices = @transform_1, window_bounds = array<i64: 1, 3, 16, 16>}, {transform_indices = @transform_2, window_bounds = array<i64: 1, 3, 8, 128>}]} {
    %cst = arith.constant 0.000000e+00 : f32
    %0 = vector.broadcast %cst : f32 to vector<16x16xf32>
    %cst_0 = arith.constant 0.000000e+00 : f32
    %1 = vector.broadcast %cst_0 : f32 to vector<16x16xf32>
    %cst_1 = arith.constant 0.000000e+00 : f32
    %2 = vector.broadcast %cst_1 : f32 to vector<16x16xf32>
    %c0 = arith.constant 0 : index
    %c0_2 = arith.constant 0 : index
    %c0_3 = arith.constant 0 : index
    %c0_4 = arith.constant 0 : index
    %3 = vector.load %arg1[%c0, %c0_2, %c0_3, %c0_4] : memref<1x10x16x16xf32, #tpu.memory_space<vmem>>, vector<1x1x16x16xf32>
    %4 = vector.shape_cast %3 : vector<1x1x16x16xf32> to vector<16x16xf32>
    %c0_5 = arith.constant 0 : index
    %c3 = arith.constant 3 : index
    %c0_6 = arith.constant 0 : index
    %c0_7 = arith.constant 0 : index
    %5 = vector.load %arg1[%c0_5, %c3, %c0_6, %c0_7] : memref<1x10x16x16xf32, #tpu.memory_space<vmem>>, vector<1x1x16x16xf32>
    %6 = vector.shape_cast %5 : vector<1x1x16x16xf32> to vector<16x16xf32>
    %c0_8 = arith.constant 0 : index
    %c6 = arith.constant 6 : index
    %c0_9 = arith.constant 0 : index
    %c0_10 = arith.constant 0 : index
    %7 = vector.load %arg1[%c0_8, %c6, %c0_9, %c0_10] : memref<1x10x16x16xf32, #tpu.memory_space<vmem>>, vector<1x1x16x16xf32>
    %8 = vector.shape_cast %7 : vector<1x1x16x16xf32> to vector<16x16xf32>
    %c0_11 = arith.constant 0 : index
    %c0_12 = arith.constant 0 : index
    %c0_13 = arith.constant 0 : index
    %c0_14 = arith.constant 0 : index
    %9 = vector.load %arg2[%c0_11, %c0_12, %c0_13, %c0_14] : memref<1x3x16x16xf32, #tpu.memory_space<vmem>>, vector<1x1x16x16xf32>
    %10 = vector.shape_cast %9 : vector<1x1x16x16xf32> to vector<16x16xf32>
    %c15_i32 = arith.constant 15 : i32
    %11 = tpu.dynamic_rotate %10 by %c15_i32 dim 1 : vector<16x16xf32>, i32 -> vector<16x16xf32>
    %12 = arith.subf %11, %10 : vector<16x16xf32>
    %c15_i32_15 = arith.constant 15 : i32
    %13 = tpu.dynamic_rotate %10 by %c15_i32_15 dim 0 : vector<16x16xf32>, i32 -> vector<16x16xf32>
    %14 = arith.subf %13, %10 : vector<16x16xf32>
    %15 = arith.subf %4, %10 : vector<16x16xf32>
    %16 = arith.mulf %15, %15 : vector<16x16xf32>
    %17 = arith.addf %0, %16 : vector<16x16xf32>
    %18 = arith.subf %12, %6 : vector<16x16xf32>
    %19 = arith.subf %14, %8 : vector<16x16xf32>
    %20 = arith.mulf %18, %18 : vector<16x16xf32>
    %21 = arith.addf %1, %20 : vector<16x16xf32>
    %22 = arith.mulf %19, %19 : vector<16x16xf32>
    %23 = arith.addf %21, %22 : vector<16x16xf32>
    %24 = arith.addf %2, %6 : vector<16x16xf32>
    %25 = arith.addf %24, %8 : vector<16x16xf32>
    %c0_16 = arith.constant 0 : index
    %c1 = arith.constant 1 : index
    %c0_17 = arith.constant 0 : index
    %c0_18 = arith.constant 0 : index
    %26 = vector.load %arg1[%c0_16, %c1, %c0_17, %c0_18] : memref<1x10x16x16xf32, #tpu.memory_space<vmem>>, vector<1x1x16x16xf32>
    %27 = vector.shape_cast %26 : vector<1x1x16x16xf32> to vector<16x16xf32>
    %c0_19 = arith.constant 0 : index
    %c4 = arith.constant 4 : index
    %c0_20 = arith.constant 0 : index
    %c0_21 = arith.constant 0 : index
    %28 = vector.load %arg1[%c0_19, %c4, %c0_20, %c0_21] : memref<1x10x16x16xf32, #tpu.memory_space<vmem>>, vector<1x1x16x16xf32>
    %29 = vector.shape_cast %28 : vector<1x1x16x16xf32> to vector<16x16xf32>
    %c0_22 = arith.constant 0 : index
    %c7 = arith.constant 7 : index
    %c0_23 = arith.constant 0 : index
    %c0_24 = arith.constant 0 : index
    %30 = vector.load %arg1[%c0_22, %c7, %c0_23, %c0_24] : memref<1x10x16x16xf32, #tpu.memory_space<vmem>>, vector<1x1x16x16xf32>
    %31 = vector.shape_cast %30 : vector<1x1x16x16xf32> to vector<16x16xf32>
    %c0_25 = arith.constant 0 : index
    %c1_26 = arith.constant 1 : index
    %c0_27 = arith.constant 0 : index
    %c0_28 = arith.constant 0 : index
    %32 = vector.load %arg2[%c0_25, %c1_26, %c0_27, %c0_28] : memref<1x3x16x16xf32, #tpu.memory_space<vmem>>, vector<1x1x16x16xf32>
    %33 = vector.shape_cast %32 : vector<1x1x16x16xf32> to vector<16x16xf32>
    %c15_i32_29 = arith.constant 15 : i32
    %34 = tpu.dynamic_rotate %33 by %c15_i32_29 dim 1 : vector<16x16xf32>, i32 -> vector<16x16xf32>
    %35 = arith.subf %34, %33 : vector<16x16xf32>
    %c15_i32_30 = arith.constant 15 : i32
    %36 = tpu.dynamic_rotate %33 by %c15_i32_30 dim 0 : vector<16x16xf32>, i32 -> vector<16x16xf32>
    %37 = arith.subf %36, %33 : vector<16x16xf32>
    %38 = arith.subf %27, %33 : vector<16x16xf32>
    %39 = arith.mulf %38, %38 : vector<16x16xf32>
    %40 = arith.addf %17, %39 : vector<16x16xf32>
    %41 = arith.subf %35, %29 : vector<16x16xf32>
    %42 = arith.subf %37, %31 : vector<16x16xf32>
    %43 = arith.mulf %41, %41 : vector<16x16xf32>
    %44 = arith.addf %23, %43 : vector<16x16xf32>
    %45 = arith.mulf %42, %42 : vector<16x16xf32>
    %46 = arith.addf %44, %45 : vector<16x16xf32>
    %47 = arith.addf %25, %29 : vector<16x16xf32>
    %48 = arith.addf %47, %31 : vector<16x16xf32>
    %c0_31 = arith.constant 0 : index
    %c2 = arith.constant 2 : index
    %c0_32 = arith.constant 0 : index
    %c0_33 = arith.constant 0 : index
    %49 = vector.load %arg1[%c0_31, %c2, %c0_32, %c0_33] : memref<1x10x16x16xf32, #tpu.memory_space<vmem>>, vector<1x1x16x16xf32>
    %50 = vector.shape_cast %49 : vector<1x1x16x16xf32> to vector<16x16xf32>
    %c0_34 = arith.constant 0 : index
    %c5 = arith.constant 5 : index
    %c0_35 = arith.constant 0 : index
    %c0_36 = arith.constant 0 : index
    %51 = vector.load %arg1[%c0_34, %c5, %c0_35, %c0_36] : memref<1x10x16x16xf32, #tpu.memory_space<vmem>>, vector<1x1x16x16xf32>
    %52 = vector.shape_cast %51 : vector<1x1x16x16xf32> to vector<16x16xf32>
    %c0_37 = arith.constant 0 : index
    %c8 = arith.constant 8 : index
    %c0_38 = arith.constant 0 : index
    %c0_39 = arith.constant 0 : index
    %53 = vector.load %arg1[%c0_37, %c8, %c0_38, %c0_39] : memref<1x10x16x16xf32, #tpu.memory_space<vmem>>, vector<1x1x16x16xf32>
    %54 = vector.shape_cast %53 : vector<1x1x16x16xf32> to vector<16x16xf32>
    %c0_40 = arith.constant 0 : index
    %c2_41 = arith.constant 2 : index
    %c0_42 = arith.constant 0 : index
    %c0_43 = arith.constant 0 : index
    %55 = vector.load %arg2[%c0_40, %c2_41, %c0_42, %c0_43] : memref<1x3x16x16xf32, #tpu.memory_space<vmem>>, vector<1x1x16x16xf32>
    %56 = vector.shape_cast %55 : vector<1x1x16x16xf32> to vector<16x16xf32>
    %c15_i32_44 = arith.constant 15 : i32
    %57 = tpu.dynamic_rotate %56 by %c15_i32_44 dim 1 : vector<16x16xf32>, i32 -> vector<16x16xf32>
    %58 = arith.subf %57, %56 : vector<16x16xf32>
    %c15_i32_45 = arith.constant 15 : i32
    %59 = tpu.dynamic_rotate %56 by %c15_i32_45 dim 0 : vector<16x16xf32>, i32 -> vector<16x16xf32>
    %60 = arith.subf %59, %56 : vector<16x16xf32>
    %61 = arith.subf %50, %56 : vector<16x16xf32>
    %62 = arith.mulf %61, %61 : vector<16x16xf32>
    %63 = arith.addf %40, %62 : vector<16x16xf32>
    %64 = arith.subf %58, %52 : vector<16x16xf32>
    %65 = arith.subf %60, %54 : vector<16x16xf32>
    %66 = arith.mulf %64, %64 : vector<16x16xf32>
    %67 = arith.addf %46, %66 : vector<16x16xf32>
    %68 = arith.mulf %65, %65 : vector<16x16xf32>
    %69 = arith.addf %67, %68 : vector<16x16xf32>
    %70 = arith.addf %48, %52 : vector<16x16xf32>
    %71 = arith.addf %70, %54 : vector<16x16xf32>
    %c0_46 = arith.constant 0 : index
    %c9 = arith.constant 9 : index
    %c0_47 = arith.constant 0 : index
    %c0_48 = arith.constant 0 : index
    %72 = vector.load %arg1[%c0_46, %c9, %c0_47, %c0_48] : memref<1x10x16x16xf32, #tpu.memory_space<vmem>>, vector<1x1x16x16xf32>
    %73 = vector.shape_cast %72 : vector<1x1x16x16xf32> to vector<16x16xf32>
    %74 = vector.shape_cast %63 : vector<16x16xf32> to vector<1x16x16xf32>
    %cst_49 = arith.constant dense<0.000000e+00> : vector<1xf32>
    %75 = vector.multi_reduction <add>, %74, %cst_49 [1, 2] : vector<1x16x16xf32> to vector<1xf32>
    %76 = vector.shape_cast %75 : vector<1xf32> to vector<1x1x1xf32>
    %77 = vector.extract %76[0, 0, 0] : f32 from vector<1x1x1xf32>
    %78 = vector.shape_cast %69 : vector<16x16xf32> to vector<1x16x16xf32>
    %cst_50 = arith.constant dense<0.000000e+00> : vector<1xf32>
    %79 = vector.multi_reduction <add>, %78, %cst_50 [1, 2] : vector<1x16x16xf32> to vector<1xf32>
    %80 = vector.shape_cast %79 : vector<1xf32> to vector<1x1x1xf32>
    %81 = vector.extract %80[0, 0, 0] : f32 from vector<1x1x1xf32>
    %cst_51 = arith.constant 0.000000e+00 : f32
    %82 = vector.broadcast %cst_51 : f32 to vector<16x16xf32>
    %83 = arith.cmpf one, %71, %82 : vector<16x16xf32>
    %84 = arith.extui %83 : vector<16x16xi1> to vector<16x16xi32>
    %85 = arith.sitofp %84 : vector<16x16xi32> to vector<16x16xf32>
    %86 = vector.shape_cast %85 : vector<16x16xf32> to vector<1x16x16xf32>
    %cst_52 = arith.constant dense<0.000000e+00> : vector<1xf32>
    %87 = vector.multi_reduction <add>, %86, %cst_52 [1, 2] : vector<1x16x16xf32> to vector<1xf32>
    %88 = vector.shape_cast %87 : vector<1xf32> to vector<1x1x1xf32>
    %89 = vector.extract %88[0, 0, 0] : f32 from vector<1x1x1xf32>
    %90 = vector.shape_cast %73 : vector<16x16xf32> to vector<1x16x16xf32>
    %cst_53 = arith.constant dense<0.000000e+00> : vector<1xf32>
    %91 = vector.multi_reduction <add>, %90, %cst_53 [1, 2] : vector<1x16x16xf32> to vector<1xf32>
    %92 = vector.shape_cast %91 : vector<1xf32> to vector<1x1x1xf32>
    %93 = vector.extract %92[0, 0, 0] : f32 from vector<1x1x1xf32>
    %cst_54 = arith.constant 2.560000e+02 : f32
    %94 = arith.divf %93, %cst_54 : f32
    %95 = arith.mulf %89, %94 : f32
    %96 = vector.broadcast %77 : f32 to vector<8x128xf32>
    %c0_55 = arith.constant 0 : index
    %c0_56 = arith.constant 0 : index
    %c0_57 = arith.constant 0 : index
    %c0_58 = arith.constant 0 : index
    %97 = vector.load %arg3[%c0_55, %c0_56, %c0_57, %c0_58] : memref<1x3x8x128xf32, #tpu.memory_space<vmem>>, vector<1x1x8x128xf32>
    %98 = vector.shape_cast %97 : vector<1x1x8x128xf32> to vector<8x128xf32>
    %99 = vector.shape_cast %96 : vector<8x128xf32> to vector<1x1x8x128xf32>
    tpu.vector_store %arg3[%c0_55, %c0_56, %c0_57, %c0_58], %99 {strides = array<i32>} : memref<1x3x8x128xf32, #tpu.memory_space<vmem>>, vector<1x1x8x128xf32>,
    %100 = vector.broadcast %81 : f32 to vector<8x128xf32>
    %c0_59 = arith.constant 0 : index
    %c1_60 = arith.constant 1 : index
    %c0_61 = arith.constant 0 : index
    %c0_62 = arith.constant 0 : index
    %101 = vector.load %arg3[%c0_59, %c1_60, %c0_61, %c0_62] : memref<1x3x8x128xf32, #tpu.memory_space<vmem>>, vector<1x1x8x128xf32>
    %102 = vector.shape_cast %101 : vector<1x1x8x128xf32> to vector<8x128xf32>
    %103 = vector.shape_cast %100 : vector<8x128xf32> to vector<1x1x8x128xf32>
    tpu.vector_store %arg3[%c0_59, %c1_60, %c0_61, %c0_62], %103 {strides = array<i32>} : memref<1x3x8x128xf32, #tpu.memory_space<vmem>>, vector<1x1x8x128xf32>,
    %104 = vector.broadcast %95 : f32 to vector<8x128xf32>
    %c0_63 = arith.constant 0 : index
    %c2_64 = arith.constant 2 : index
    %c0_65 = arith.constant 0 : index
    %c0_66 = arith.constant 0 : index
    %105 = vector.load %arg3[%c0_63, %c2_64, %c0_65, %c0_66] : memref<1x3x8x128xf32, #tpu.memory_space<vmem>>, vector<1x1x8x128xf32>
    %106 = vector.shape_cast %105 : vector<1x1x8x128xf32> to vector<8x128xf32>
    %107 = vector.shape_cast %104 : vector<8x128xf32> to vector<1x1x8x128xf32>
    tpu.vector_store %arg3[%c0_63, %c2_64, %c0_65, %c0_66], %107 {strides = array<i32>} : memref<1x3x8x128xf32, #tpu.memory_space<vmem>>, vector<1x1x8x128xf32>,
    return
  }
  func.func @transform_0(%arg0: i32) -> (i32, i32, i32, i32) {
    %c0_i32 = arith.constant 0 : i32
    %c0_i32_0 = arith.constant 0 : i32
    %c0_i32_1 = arith.constant 0 : i32
    %c0_i32_2 = arith.constant 0 : i32
    return %arg0, %c0_i32, %c0_i32_0, %c0_i32_1 : i32, i32, i32, i32
  }
  func.func @transform_1(%arg0: i32) -> (i32, i32, i32, i32) {
    %c0_i32 = arith.constant 0 : i32
    %c0_i32_0 = arith.constant 0 : i32
    %c0_i32_1 = arith.constant 0 : i32
    %c0_i32_2 = arith.constant 0 : i32
    return %arg0, %c0_i32, %c0_i32_0, %c0_i32_1 : i32, i32, i32, i32
  }
  func.func @transform_2(%arg0: i32) -> (i32, i32, i32, i32) {
    %c0_i32 = arith.constant 0 : i32
    %c0_i32_0 = arith.constant 0 : i32
    %c0_i32_1 = arith.constant 0 : i32
    %c0_i32_2 = arith.constant 0 : i32
    return %arg0, %c0_i32, %c0_i32_0, %c0_i32_1 : i32, i32, i32, i32
  }
}

</mosaic_0001>

<bundles_post_ra>
// kernel: tpu_custom_call.1
= control target key start
LH: loop header
LB: loop body
LE: loop exit
PB: predicated region body
PF: predicated region fallthrough
CT: control target
= control target key end

     0   :  { %7 = vsyncpa [#allocation3], 0  ;;  %s1272_s0 = inlined_call_operand.hbm [shape: f32[2,10,16,16], index: 0, kind: input, shape index: {}]   ;;  %s1273_s1 = inlined_call_operand.hbm [shape: f32[2,3,16,16], index: 1, kind: input, shape index: {}]   ;;  %s1274_s2 = inlined_call_operand.hbm [shape: f32[2,3,8,128], index: 2, kind: output, shape index: {}]  }
   0x1   :  { %9 = vsyncpa [#allocation3 + $0x1], 0 }
   0x2   :  { %10 = vsyncpa [#allocation6], 0 }
   0x3   :  { %12 = vsyncpa [#allocation6 + $0x1], 0 }
   0x4   :  { %13 = vsyncpa [#allocation4], 0 }
   0x5   :  { %15 = vsyncpa [#allocation4 + $0x1], 0  ;;  %s888_s9 = smov 0   ;;  %s890_s10 = smov 0  }
   0x6   :  { %s892_s11 = smov 0   ;;  %s894_s12 = smov 0  }
   0x7 LB: > { %s909_s13 = sadd.s32 4294967295, %s860_s12   ;;  %s626_s14 = sadd.s32 4294967294, %s860_s12   ;;  %s860_s12 = sphi %s894_s12, %s1289_s12   ;;  %s856_s11 = sphi %s892_s11, %s1288_s11   ;;  %s852_s10 = sphi %s890_s10, %s1287_s10   ;;  %s848_s9 = sphi %s888_s9, %s1286_s9  }
   0x8   : > { %s913_s15 = sadd.s32 1, %s860_s12   ;;  %s28_s16 = sadd.s32 1, %s856_s11 }
   0x9   : > { %s25_s17 = ssub.s32 %s860_s12, %s913_s15  ;;  %p35_p0 = scmp.ne.s32.totalorder %s856_s11, %s852_s10 }
   0xa   : > { %p26_p1 = scmp.eq.s32.totalorder %s25_s17, 0  ;;  %p36_p2 = scmp.eq.s32.totalorder %s860_s12, 0 }
   0xb   : > { %p41_p3 = scmp.ne.s32.totalorder %s852_s10, %s848_s9  ;;  %p42_p4 = scmp.eq.s32.totalorder %s909_s13, 0 }
   0xc   : > { %s925_s18 = scalar_select %p26_p1, %s856_s11, %s28_s16  }
   0xd   : > { %p37_p5 = por %p36_p2, %p35_p0  ;;  %p927_p6 = por %p42_p4, %p41_p3 }
   0xe   : > { %p91_p7 = scmp.eq.s32.totalorder %s909_s13, 1  ;;  %p97_p8 = scmp.eq.s32.totalorder %s626_s14, 1 }
   0xf   : > { %s1277_s19 = scalar_select %p927_p6, 1, 0 }
  0x10   : > { %p694_p10 = scmp.lt.s32.totalorder %s860_s12, 2  ;;  %p934_p11 = por %p91_p7, %p35_p0 }
  0x11   : > { %p938_p12 = por %p97_p8, %p41_p3  ;;  %s943_s22 = sand.u32 1, %s856_s11  }
  0x12   : > { %s1278_s20 = scalar_select %p934_p11, 1, 0 }
  0x13   : > { %s1279_s21 = scalar_select %p938_p12, 1, 0 }
  0x14   : > { %s662_s23 = smul.u32 2560, %s860_s12  ;;  %p952_p13 = pnand %p694_p10, %p37_p5 }
  0x15   : > { %s661_s24 = smul.u32 160, %s943_s22  ;;  %s118_s3 = scalar_lea.sflag [#allocation3], %s943_s22 }
  0x16   : > { %s950_s27 = scalar_lea.hbm %s1272_s0, %s662_s23  ;;  %p738_p1 = pneg %p952_p13 }
  0x17   : > { %s121_s29 = scalar_lea.vmem [#allocation2], %s661_s24  ;;  %s736_s4 = scalar_lea.hbm %s950_s27, 2560 }
  0x18   : > { %s128_s30 = sshll.u32 %s121_s29, 4  ;;  %p737_p0 = scmp.ne.s32.totalorder %s950_s27, %s736_s4  ;;  %s956_s30 = int_to_ptr.vmem [resolvable:$true] %s128_s30 }
  0x19   : > { %s741_s7 = scalar_lea.hbm %s1272_s0, 5120  ;;  %p742_p4 = scmp.lt.s32.totalorder %s950_s27, %s1272_s0 }
  0x1a   : > { %p739_p2 = pnand %p738_p1, %p737_p0  ;;  %p743_p5 = scmp.lt.s32.totalorder %s741_s7, %s736_s4 }
  0x1c   : > { %p740_p3 = pneg %p739_p2  ;;  %p744_p7 = por %p743_p5, %p742_p4 }
  0x1e   : > { %p745_p8 = pnand %p744_p7, %p740_p3 }
  0x20   : > { %748 = shalt.err (!%p745_p8)
}
  0x21   : > { %s749_s16 = scalar_lea.vmem %s956_s30, 2560  ;;  %s862_s17 = smov [#allocation2]  }
  0x22   : > { %p750_p10 = scmp.ne.s32.totalorder %s956_s30, %s749_s16  ;;  %s754_s23 = sshll.u32 %s862_s17, 4  ;;  %s755_s23 = int_to_ptr.vmem [resolvable:$false] %s754_s23 }
  0x23   : > { %s756_s24 = scalar_lea.vmem %s755_s23, 5120  ;;  %p757_p9 = scmp.lt.s32.totalorder %s956_s30, %s755_s23 }
  0x24   : > { %p752_p0 = pnand %p750_p10, %p738_p1  ;;  %p758_p12 = scmp.lt.s32.totalorder %s756_s24, %s749_s16 }
  0x26   : > { %p753_p2 = pneg %p752_p0  ;;  %p759_p11 = por %p758_p12, %p757_p9 }
  0x28   : > { %p760_p4 = pnand %p759_p11, %p753_p2 }
  0x2a   : > { %763 = shalt.err (!%p760_p4)
}
  0x2b   : > { %s863_s25 = smov 128   ;;  %s864_s26 = smov 8  }
  0x2c   : > { %686 = dma.hbm_to_vmem [thread:$0]  (!%p952_p13), %s950_s27, 2560, %s956_s30, %s118_s3, %s863_s25, %s863_s25, %s864_s26  }
  0x2d   : > { %p631_p9 = scmp.ge.s32.totalorder %s860_s12, 1  ;;  %p157_p11 = scmp.lt.s32.totalorder %s860_s12, 3 }
  0x2e   : > { %s663_s29 = smul.u32 48, %s943_s22  ;;  %s139_s27 = scalar_lea.sflag [#allocation6], %s943_s22 }
  0x2f   : > { %p991_p12 = pnand %p631_p9, %p157_p11  ;;  %s664_s5 = smul.u32 768, %s860_s12 }
  0x30   : > { %s142_s14 = scalar_lea.vmem [#allocation5], %s663_s29  ;;  %s769_s23 = scalar_lea.hbm %s1273_s1, 1536 }
  0x31   : > { %s999_s8 = scalar_lea.hbm %s1273_s1, %s664_s5  ;;  %s149_s16 = sshll.u32 %s142_s14, 4  ;;  %s1001_s16 = int_to_ptr.vmem [resolvable:$true] %s149_s16 }
  0x32   : > { %s764_s30 = scalar_lea.hbm %s999_s8, 768  ;;  %p770_p8 = scmp.lt.s32.totalorder %s999_s8, %s1273_s1 }
  0x33   : > { %p765_p3 = scmp.ne.s32.totalorder %s999_s8, %s764_s30  ;;  %p771_p10 = scmp.lt.s32.totalorder %s769_s23, %s764_s30 }
  0x35   : > { %p767_p5 = pnand %p765_p3, %p738_p1  ;;  %p772_p0 = por %p771_p10, %p770_p8 }
  0x37   : > { %p768_p7 = pneg %p767_p5 }
  0x39   : > { %p773_p2 = pnand %p772_p0, %p768_p7 }
  0x3b   : > { %776 = shalt.err (!%p773_p2)
}
  0x3c   : > { %s777_s22 = scalar_lea.vmem %s1001_s16, 768  ;;  %s865_s29 = smov [#allocation5]  }
  0x3d   : > { %p778_p4 = scmp.ne.s32.totalorder %s1001_s16, %s777_s22  ;;  %s782_s6 = sshll.u32 %s865_s29, 4  ;;  %s783_s6 = int_to_ptr.vmem [resolvable:$false] %s782_s6 }
  0x3e   : > { %s784_s7 = scalar_lea.vmem %s783_s6, 1536  ;;  %p785_p3 = scmp.lt.s32.totalorder %s1001_s16, %s783_s6 }
  0x3f   : > { %p780_p9 = pnand %p778_p4, %p738_p1  ;;  %p786_p5 = scmp.lt.s32.totalorder %s784_s7, %s777_s22 }
  0x41   : > { %p781_p11 = pneg %p780_p9  ;;  %p787_p6 = por %p786_p5, %p785_p3 }
  0x43   : > { %p788_p8 = pnand %p787_p6, %p781_p11 }
  0x45   : > { %791 = shalt.err (!%p788_p8)
}
  0x46   : > { %689 = dma.hbm_to_vmem [thread:$0]  (!%p952_p13), %s999_s8, 768, %s1001_s16, %s139_s27, %s863_s25, %s863_s25, %s864_s26  }
  0x47   : > { %161 = sbr.rel (%p991_p12) target bundleno = 678 (0x2a6), region = 28  ;;  %s1032_s14 = sand.u32 (!%p991_p12), 1, %s852_s10  }
  0x48   : > { %s665_s30 = smul.u32 (!%p991_p12), 160, %s1032_s14  ;;  %s164_s3 = scalar_lea.sflag (!%p991_p12), [#allocation3], %s1032_s14 }
  0x49   : > { %p1282_p6 = scmp.ne.s32.totalorder (!%p991_p12), %s1277_s19, 0 }
  0x4a   : > { %s1036_s17 = scalar_lea.vmem (!%p991_p12), [#allocation2], %s665_s30 }
  0x4c   : > { %835 = dma.done.wait (%p1282_p6), %s164_s3, 2560  }
  0x4d   : > { %837 = vsyncadd (%p1282_p6), %s164_s3, 4294964736  ;;  %s666_s28 = smul.u32 48, %s1032_s14  ;;  %s173_s25 = scalar_lea.sflag [#allocation6], %s1032_s14 }
  0x4f   : > { %s176_s26 = scalar_lea.vmem [#allocation5], %s666_s28 }
  0x50   : > { %839 = dma.done.wait (%p1282_p6), %s173_s25, 768  }
  0x51   : > { %841 = vsyncadd (%p1282_p6), %s173_s25, 4294966528  ;;  %v1048_v0 = vld [vmem:[%s176_s26] sm:$0xff]  ;;  %v1050_v1 = vld [vmem:[%s176_s26 + $0x10] sm:$0xff]  ;;  %s866_s4 = smov 16   ;;  %v237_v9 = vlaneseq  ;;  %s867_s19 = smov 1   ;;  %vm212_vm1 = vcmask 1047680  }
  0x52   : > { %213 = vrot.lane.b32.xlu0 %v1048_v0, %s866_s4  ;;  %294 = vrot.lane.b32.xlu1 %v1050_v1, %s866_s4  ;;  %v1056_v2 = vld [vmem:[%s176_s26 + $0x8] sm:$0xff]  ;;  %v1058_v3 = vld [vmem:[%s176_s26 + $0x18] sm:$0xff]  ;;  %v235_v25 = vrot.slane %v1048_v0, 1  ;;  %v316_v40 = vrot.slane %v1050_v1, 1  ;;  %vm441_vm4 = vcmask 130048   ;;  %s869_s8 = smov 127  }
  0x53   : > { %v632_v4 = vld [vmem:[%s1036_s17 + $0x30] sm:$0xff]  ;;  %v634_v5 = vld [vmem:[%s1036_s17 + $0x60] sm:$0xff]  ;;  %v633_v7 = vld [vmem:[%s1036_s17 + $0x38] sm:$0xff]  ;;  %v1077_v18 = vshrl.u32 %v237_v9, 7  ;;  %v236_v26 = vrot.slane %v1056_v2, 1  ;;  %v317_v41 = vrot.slane %v1058_v3, 1 }
  0x54   : > { %v280_v6 = vadd.f32 %v634_v5, %v632_v4  ;;  %v635_v8 = vld [vmem:[%s1036_s17 + $0x68] sm:$0xff]  ;;  %v638_v11 = vld [vmem:[%s1036_s17 + $0x40] sm:$0xff]  ;;  %v1075_v17 = vld [vmem:[%s1036_s17 + $0x70] sm:$0xff]  ;;  %s667_s16 = smul.u32 24, %s1032_s14  ;;  %s517_s25 = scalar_lea.sflag [#allocation4], %s1032_s14 }
  0x55   : > { %v281_v10 = vadd.f32 %v635_v8, %v633_v7  ;;  %v639_v13 = vld [vmem:[%s1036_s17 + $0x48] sm:$0xff]  ;;  %v1070_v14 = vld [vmem:[%s176_s26 + $0x20] sm:$0xff]  ;;  %v1081_v20 = vld [vmem:[%s1036_s17 + $0x78] sm:$0xff]  ;;  %vm239_vm0 = vcmp.lt.s32.totalorder %v1077_v18, 7  ;;  %s676_s29 = smul.u32 384, %s909_s13  ;;  %p1283_p1 = scmp.ne.s32.totalorder %s1278_s20, 0 }
  0x56   : > { %216 = vrot.lane.b32.xlu0 %v1056_v2, %s866_s4  ;;  %297 = vrot.lane.b32.xlu1 %v1058_v3, %s866_s4  ;;  %v356_v12 = vadd.f32 %v638_v11, %v280_v6  ;;  %v1072_v15 = vld [vmem:[%s176_s26 + $0x28] sm:$0xff]  ;;  %v1084_v21 = vld [vmem:[%s1036_s17 + $0x50] sm:$0xff]  ;;  %v240_v32 = vsel %vm239_vm0, %v235_v25, %v236_v26  ;;  %v241_v33 = vsel %vm239_vm0, %v236_v26, %v235_v25  ;;  %v394_v47 = vrot.slane %v1070_v14, 1  ;;  %s1217_s23 = scalar_lea.vmem [#allocation7], %s667_s16  ;;  %s870_s13 = smov [#allocation7]  }
  0x57   : > { %v357_v16 = vadd.f32 %v639_v13, %v281_v10  ;;  %v1093_v24 = vld [vmem:[%s1036_s17 + $0x58] sm:$0xff]  ;;  %v648_v27 = vld [vmem:[%s1036_s17 + $0x80] sm:$0xff]  ;;  %v1103_v30 = vld [vmem:[%s1036_s17 + $0x88] sm:$0xff]  ;;  %v242_v34 = vsub.f32 %v240_v32, %v1048_v0  ;;  %v243_v35 = vsub.f32 %v241_v33, %v1056_v2  ;;  %v318_v46 = vsel %vm239_vm0, %v316_v40, %v317_v41  ;;  %s530_s24 = sshll.u32 %s1217_s23, 4  ;;  %s1228_s28 = scalar_lea.hbm %s1274_s2, %s676_s29  ;;  %s1223_s24 = int_to_ptr.vmem [resolvable:$true] %s530_s24 }
  0x58   : > { %v358_v19 = vadd.f32 %v1075_v17, %v356_v12  ;;  %v395_v48 = vrot.slane %v1072_v15, 1  ;;  %v320_v52 = vsub.f32 %v318_v46, %v1050_v1  ;;  %v319_v53 = vsel %vm239_vm0, %v317_v41, %v316_v40  ;;  %s792_s26 = scalar_lea.vmem %s1223_s24, 384 }
  0x59   : > { %v359_v22 = vadd.f32 %v1081_v20, %v357_v16  ;;  %v260_v36 = vsub.f32 %v242_v34, %v634_v5  ;;  %v261_v37 = vsub.f32 %v243_v35, %v635_v8  ;;  %v321_v59 = vsub.f32 %v319_v53, %v1058_v3  ;;  %p793_p13 = scmp.ne.s32.totalorder %s1223_s24, %s792_s26 }
  0x5a   : > { %372 = vrot.lane.b32.xlu0 %v1070_v14, %s866_s4  ;;  %375 = vrot.lane.b32.xlu1 %v1072_v15, %s866_s4  ;;  %v434_v23 = vadd.f32 %v1084_v21, %v358_v19  ;;  %v396_v55 = vsel %vm239_vm0, %v394_v47, %v395_v48  ;;  %v338_v60 = vsub.f32 %v320_v52, %v1075_v17  ;;  %v868_v12 = vmov 0.0  }
  0x5b   : > { %v435_v28 = vadd.f32 %v1093_v24, %v359_v22  ;;  %v266_v38 = vmul.f32 %v260_v36, %v260_v36  ;;  %v267_v39 = vmul.f32 %v261_v37, %v261_v37  ;;  %v398_v61 = vsub.f32 %v396_v55, %v1070_v14  ;;  %p794_p12 = pnand %p793_p13, %p1283_p1 }
  0x5c   : > { %v1100_v29 = vadd.f32 %v648_v27, %v434_v23  ;;  %v397_v63 = vsel %vm239_vm0, %v395_v48, %v394_v47  ;;  %v344_v5 = vmul.f32 %v338_v60, %v338_v60 }
  0x5d   : > { %v1106_v31 = vadd.f32 %v1103_v30, %v435_v28  ;;  %v416_v6 = vsub.f32 %v398_v61, %v648_v27  ;;  %p795_p7 = pneg %p794_p12 }
  0x5e   : > { %227 = vrot.lane.b32.xlu0 %v1048_v0, %s867_s19  ;;  %229 = vrot.lane.b32.xlu1 %v1056_v2, %s867_s19  ;;  %vm474_vm2 = vcmp.ne.f32.partialorder %v1100_v29, 0.0 }
  0x5f   : > { %v422_v9 = vmul.f32 %v416_v6, %v416_v6  ;;  %vm475_vm3 = vcmp.ne.f32.partialorder %v1106_v31, 0.0 }
  0x60   : > { %v655_v16 = vsel %vm475_vm3, 1.0, %v868_v12 }
  0x61   : > { %v481_v18 = vsel %vm441_vm4, %v655_v16, 0.0 }
  0x62   : > { %252 = vrot.lane.b32.xlu0 %v632_v4, %s867_s19  ;;  %254 = vrot.lane.b32.xlu1 %v633_v7, %s867_s19  ;;  %v339_v4 = vsub.f32 %v321_v59, %v1081_v20  ;;  %v399_v7 = vsub.f32 %v397_v63, %v1072_v15 }
  0x64   : > { %v345_v8 = vmul.f32 %v339_v4, %v339_v4  ;;  %v417_v10 = vsub.f32 %v399_v7, %v1103_v30 }
  0x66   : > { %308 = vrot.lane.b32.xlu0 %v1050_v1, %s867_s19  ;;  %310 = vrot.lane.b32.xlu1 %v1058_v3, %s867_s19 }
  0x6a   : > { %330 = vrot.lane.b32.xlu0 %v638_v11, %s867_s19  ;;  %332 = vrot.lane.b32.xlu1 %v639_v13, %s867_s19  ;;  %v423_v11 = vmul.f32 %v417_v10, %v417_v10  ;;  %v654_v13 = vsel %vm474_vm2, 1.0, %v868_v12 }
  0x6b   : > { %v480_v17 = vsel %vm441_vm4, %v654_v13, 0.0 }
  0x6c   : > { %v1181_v19 = vadd.f32 %v481_v18, %v480_v17 }
  0x6e   : > { %270 = vrot.lane.b32.xlu0 %v266_v38, %s867_s19  ;;  %272 = vrot.lane.b32.xlu1 %v267_v39, %s867_s19 }
  0x72   : > { %386 = vrot.lane.b32.xlu0 %v1070_v14, %s867_s19  ;;  %388 = vrot.lane.b32.xlu1 %v1072_v15, %s867_s19 }
  0xc4   : > { %v214_v42 = vpop.permute.xlu0 %213  ;;  %v295_v43 = vpop.permute.xlu1 %294 }
  0xc5   : > { %v215_v44 = vsel %vm212_vm1, %v214_v42, %v1048_v0  ;;  %v296_v45 = vsel %vm212_vm1, %v295_v43, %v1050_v1 }
  0xc6   : > { %219 = vrot.lane.b32.xlu0 %v215_v44, %s866_s4 }
  0xc8   : > { %v217_v49 = vpop.permute.xlu0 %216  ;;  %v298_v50 = vpop.permute.xlu1 %297 }
  0xc9   : > { %v218_v51 = vsel %vm212_vm1, %v217_v49, %v1056_v2  ;;  %v299_v54 = vsel %vm212_vm1, %v298_v50, %v1058_v3 }
  0xca   : > { %221 = vrot.lane.b32.xlu1 %v218_v51, %s866_s4  ;;  %300 = vrot.lane.b32.xlu0 %v296_v45, %s866_s4 }
  0xcc   : > { %v373_v56 = vpop.permute.xlu0 %372  ;;  %v376_v57 = vpop.permute.xlu1 %375 }
  0xcd   : > { %v374_v58 = vsel %vm212_vm1, %v373_v56, %v1070_v14  ;;  %v377_v62 = vsel %vm212_vm1, %v376_v57, %v1072_v15 }
  0xce   : > { %302 = vrot.lane.b32.xlu1 %v299_v54, %s866_s4  ;;  %378 = vrot.lane.b32.xlu0 %v374_v58, %s866_s4 }
  0xd0   : > { %v228_v20 = vpop.permute.xlu0 %227 }
  0xd2   : > { %380 = vrot.lane.b32.xlu1 %v377_v62, %s866_s4  ;;  %408 = vrot.lane.b32.xlu0 %v1084_v21, %s867_s19  ;;  %v230_v21 = vpop.permute.xlu1 %229  ;;  %s796_s4 = sshll.u32 %s870_s13, 4  ;;  %s797_s4 = int_to_ptr.vmem [resolvable:$false] %s796_s4 }
  0xd3   : > { %p799_p10 = scmp.lt.s32.totalorder %s1223_s24, %s797_s4 }
  0xd4   : > { %v253_v22 = vpop.permute.xlu0 %252 }
  0xd6   : > { %410 = vrot.lane.b32.xlu1 %v1093_v24, %s867_s19  ;;  %348 = vrot.lane.b32.xlu0 %v344_v5, %s867_s19  ;;  %v255_v23 = vpop.permute.xlu1 %254 }
  0xd8   : > { %v309_v24 = vpop.permute.xlu0 %308 }
  0xda   : > { %350 = vrot.lane.b32.xlu1 %v345_v8, %s867_s19  ;;  %426 = vrot.lane.b32.xlu0 %v422_v9, %s867_s19  ;;  %v311_v25 = vpop.permute.xlu1 %310 }
  0xdc   : > { %v331_v26 = vpop.permute.xlu0 %330 }
  0xde   : > { %428 = vrot.lane.b32.xlu1 %v423_v11, %s867_s19  ;;  %v333_v27 = vpop.permute.xlu1 %332  ;;  %s798_s19 = scalar_lea.vmem %s797_s4, 768 }
  0xdf   : > { %p800_p0 = scmp.lt.s32.totalorder %s798_s19, %s792_s26 }
  0xe0   : > { %v271_v28 = vpop.permute.xlu0 %270 }
  0xe1   : > { %p801_p2 = por %p800_p0, %p799_p10 }
  0xe2   : > { %v273_v29 = vpop.permute.xlu1 %272 }
  0xe3   : > { %p802_p4 = pnand %p801_p2, %p795_p7 }
  0xe4   : > { %v387_v30 = vpop.permute.xlu0 %386 }
  0xe6   : > { %v389_v31 = vpop.permute.xlu1 %388 }
 0x138   : > { %v220_v32 = vpop.permute.xlu0 %219 }
 0x139   : > { %v223_v33 = vsel %vm212_vm1, %v220_v32, %v1048_v0 }
 0x13a   : > { %v233_v34 = vsub.f32 %v223_v33, %v228_v20 }
 0x13c   : > { %v222_v35 = vpop.permute.xlu1 %221  ;;  %v301_v36 = vpop.permute.xlu0 %300  ;;  %v258_v37 = vsub.f32 %v233_v34, %v253_v22  ;;  %v203_v22 = vld [vmem:[%s1036_s17 + $0x8] sm:$0xff] }
 0x13d   : > { %v224_v38 = vsel %vm212_vm1, %v222_v35, %v1056_v2  ;;  %v304_v39 = vsel %vm212_vm1, %v301_v36, %v1050_v1 }
 0x13e   : > { %v234_v40 = vsub.f32 %v224_v38, %v230_v21  ;;  %v314_v41 = vsub.f32 %v304_v39, %v309_v24  ;;  %v262_v45 = vmul.f32 %v258_v37, %v258_v37  ;;  %v202_v21 = vld [vmem:[%s1036_s17] sm:$0xff]  ;;  %v637_v24 = vld [vmem:[%s1036_s17 + $0x18] sm:$0xff] }
 0x140   : > { %v336_v42 = vsub.f32 %v314_v41, %v331_v26  ;;  %v303_v43 = vpop.permute.xlu1 %302  ;;  %v379_v44 = vpop.permute.xlu0 %378  ;;  %v259_v46 = vsub.f32 %v234_v40, %v255_v23  ;;  %v276_v58 = vadd.f32 %v271_v28, %v262_v45  ;;  %v636_v23 = vld [vmem:[%s1036_s17 + $0x10] sm:$0xff]  ;;  %v245_v26 = vsub.f32 %v203_v22, %v1056_v2 }
 0x141   : > { %v305_v47 = vsel %vm212_vm1, %v303_v43, %v1058_v3  ;;  %v382_v48 = vsel %vm212_vm1, %v379_v44, %v1070_v14  ;;  %v323_v28 = vsub.f32 %v637_v24, %v1058_v3 }
 0x142   : > { %v315_v49 = vsub.f32 %v305_v47, %v311_v25  ;;  %v392_v50 = vsub.f32 %v382_v48, %v387_v30  ;;  %v340_v51 = vmul.f32 %v336_v42, %v336_v42  ;;  %v263_v55 = vmul.f32 %v259_v46, %v259_v46  ;;  %v645_v30 = vld [vmem:[%s1036_s17 + $0x28] sm:$0xff]  ;;  %v652_v42 = vld [vmem:[%s1036_s17 + $0x90] sm:$0xff] }
 0x143   : > { %v244_v25 = vsub.f32 %v202_v21, %v1048_v0  ;;  %v401_v32 = vsub.f32 %v645_v30, %v1072_v15  ;;  %v247_v34 = vmul.f32 %v245_v26, %v245_v26  ;;  %v325_v36 = vmul.f32 %v323_v28, %v323_v28 }
 0x144   : > { %v337_v52 = vsub.f32 %v315_v49, %v333_v27  ;;  %v381_v53 = vpop.permute.xlu1 %380  ;;  %v409_v54 = vpop.permute.xlu0 %408  ;;  %v342_v60 = vadd.f32 %v340_v51, %v276_v58  ;;  %v277_v7 = vadd.f32 %v273_v29, %v263_v55  ;;  %v322_v27 = vsub.f32 %v636_v23, %v1050_v1  ;;  %v644_v29 = vld [vmem:[%s1036_s17 + $0x20] sm:$0xff] }
 0x145   : > { %v383_v56 = vsel %vm212_vm1, %v381_v53, %v1072_v15  ;;  %v414_v57 = vsub.f32 %v392_v50, %v409_v54  ;;  %v246_v33 = vmul.f32 %v244_v25, %v244_v25  ;;  %v327_v0 = vadd.f32 %v325_v36, %v247_v34 }
 0x146   : > { %v393_v59 = vsub.f32 %v383_v56, %v389_v31  ;;  %v341_v61 = vmul.f32 %v337_v52, %v337_v52  ;;  %v400_v31 = vsub.f32 %v644_v29, %v1070_v14  ;;  %v324_v35 = vmul.f32 %v322_v27, %v322_v27  ;;  %v653_v14 = vld [vmem:[%s1036_s17 + $0x98] sm:$0xff] }
 0x147   : > { %v418_v4 = vmul.f32 %v414_v57, %v414_v57  ;;  %v403_v2 = vmul.f32 %v401_v32, %v401_v32  ;;  %v492_v15 = vsel %vm441_vm4, %v652_v42, 0.0  ;;  %v493_v43 = vsel %vm441_vm4, %v653_v14, 0.0 }
 0x148   : > { %v411_v62 = vpop.permute.xlu1 %410  ;;  %v349_v63 = vpop.permute.xlu0 %348  ;;  %v343_v8 = vadd.f32 %v341_v61, %v277_v7  ;;  %v326_v37 = vadd.f32 %v324_v35, %v246_v33  ;;  %v402_v38 = vmul.f32 %v400_v31, %v400_v31  ;;  %v494_v44 = vadd.f32 %v493_v43, %v492_v15 }
 0x149   : > { %v415_v5 = vsub.f32 %v393_v59, %v411_v62  ;;  %v354_v6 = vadd.f32 %v349_v63, %v342_v60  ;;  %v405_v1 = vadd.f32 %v403_v2, %v327_v0 }
 0x14a   : > { %v404_v39 = vadd.f32 %v402_v38, %v326_v37 }
 0x14b   : > { %v420_v9 = vadd.f32 %v418_v4, %v354_v6  ;;  %v419_v12 = vmul.f32 %v415_v5, %v415_v5  ;;  %v443_v40 = vsel %vm441_vm4, %v405_v1, 0.0 }
 0x14c   : > { %v351_v10 = vpop.permute.xlu1 %350  ;;  %v427_v11 = vpop.permute.xlu0 %426  ;;  %v442_v3 = vsel %vm441_vm4, %v404_v39, 0.0 }
 0x14d   : > { %v355_v13 = vadd.f32 %v351_v10, %v343_v8  ;;  %v432_v16 = vadd.f32 %v427_v11, %v420_v9  ;;  %v444_v41 = vadd.f32 %v443_v40, %v442_v3 }
 0x14f   : > { %456 = vrot.lane.b32.xlu0 %v432_v16, %s869_s8  ;;  %v421_v17 = vadd.f32 %v419_v12, %v355_v13 }
 0x150   : > { %v429_v18 = vpop.permute.xlu1 %428 }
 0x151   : > { %v433_v20 = vadd.f32 %v429_v18, %v421_v17 }
 0x153   : > { %458 = vrot.lane.b32.xlu1 %v433_v20, %s869_s8 }
 0x16e   : > { %445 = vadd.xlane.f32.xlu0 %v444_v41 }
 0x172   : > { %483 = vadd.xlane.f32.xlu0 %v1181_v19 }
 0x176   : > { %495 = vadd.xlane.f32.xlu0 %v494_v44 }
 0x1c1   : > { %v457_v45 = vpop.permute.xlu0 %456 }
 0x1c2   : > { %v462_v47 = vsel %vm441_vm4, %v457_v45, 0.0 }
 0x1c5   : > { %v459_v46 = vpop.permute.xlu1 %458 }
 0x1c6   : > { %v463_v48 = vsel %vm441_vm4, %v459_v46, 0.0 }
 0x1c7   : > { %v464_v49 = vadd.f32 %v463_v48, %v462_v47 }
 0x1c9   : > { %465 = vadd.xlane.f32.xlu1 %v464_v49 }
 0x1f7   : > { %v446_v50 = vpop.xlane.xlu0 %445 }
 0x1f8   : > { %v447_v51 = vrot.slane %v446_v50, 4 }
 0x1fa   : > { %v448_v52 = vadd.f32 %v447_v51, %v446_v50 }
 0x1fb   : > { %v484_v57 = vpop.xlane.xlu0 %483 }
 0x1fc   : > { %v449_v53 = vrot.slane %v448_v52, 2  ;;  %v485_v59 = vrot.slane %v484_v57, 4 }
 0x1fe   : > { %v450_v54 = vadd.f32 %v449_v53, %v448_v52  ;;  %v486_v61 = vadd.f32 %v485_v59, %v484_v57 }
 0x1ff   : > { %v496_v58 = vpop.xlane.xlu0 %495 }
 0x200   : > { %v451_v55 = vrot.slane %v450_v54, 1  ;;  %v497_v60 = vrot.slane %v496_v58, 4  ;;  %v487_v63 = vrot.slane %v486_v61, 2 }
 0x202   : > { %v452_v56 = vadd.f32 %v451_v55, %v450_v54  ;;  %v498_v62 = vadd.f32 %v497_v60, %v496_v58  ;;  %v488_v8 = vadd.f32 %v487_v63, %v486_v61 }
 0x204   : > { %668 = vpush %v452_v56  ;;  %v499_v5 = vrot.slane %v498_v62, 2  ;;  %v489_v12 = vrot.slane %v488_v8, 1 }
 0x206   : > { %v500_v9 = vadd.f32 %v499_v5, %v498_v62  ;;  %v490_v18 = vadd.f32 %v489_v12, %v488_v8 }
 0x208   : > { %v501_v16 = vrot.slane %v500_v9, 1 }
 0x20a   : > { %v502_v20 = vadd.f32 %v501_v16, %v500_v9 }
 0x235   : > { %s669_s27 = spop %668 }
 0x236   : > { %v508_v19 = vstv %s669_s27 }
 0x237   : > { %509 = vst [vmem:[%s1217_s23] sm:$0xff] %v508_v19 }
 0x252   : > { %v466_v4 = vpop.xlane.xlu1 %465 }
 0x253   : > { %v467_v6 = vrot.slane %v466_v4, 4 }
 0x255   : > { %v468_v7 = vadd.f32 %v467_v6, %v466_v4 }
 0x257   : > { %v469_v10 = vrot.slane %v468_v7, 2 }
 0x259   : > { %v470_v11 = vadd.f32 %v469_v10, %v468_v7 }
 0x25b   : > { %v471_v13 = vrot.slane %v470_v11, 1 }
 0x25d   : > { %v472_v17 = vadd.f32 %v471_v13, %v470_v11 }
 0x25f   : > { %670 = vpush %v472_v17 }
 0x260   : > { %672 = vpush %v490_v18 }
 0x261   : > { %674 = vpush %v502_v20 }
 0x290   : > { %s671_s5 = spop %670 }
 0x291   : > { %v510_v21 = vstv %s671_s5  ;;  %s673_s22 = spop %672 }
 0x292   : > { %656 = vst [vmem:[%s1217_s23 + $0x8] sm:$0xff] %v510_v21  ;;  %s675_s6 = spop %674 }
 0x293   : > { %s506_s7 = smul.f32 0.00390625, %s675_s6 }
 0x295   : > { %s507_s30 = smul.f32 %s673_s22, %s506_s7 }
 0x297   : > { %v513_v22 = vstv %s507_s30 }
 0x298   : > { %657 = vst [vmem:[%s1217_s23 + $0x10] sm:$0xff] %v513_v22 }
 0x299   : > { %805 = shalt.err (!%p802_p4)
}
 0x29a   : > { %s806_s8 = scalar_lea.hbm %s1228_s28, 384  ;;  %s810_s23 = scalar_lea.hbm %s1274_s2, 768 }
 0x29b   : > { %p807_p9 = scmp.ne.s32.totalorder %s1228_s28, %s806_s8  ;;  %p811_p5 = scmp.lt.s32.totalorder %s1228_s28, %s1274_s2 }
 0x29c   : > { %p812_p8 = scmp.lt.s32.totalorder %s810_s23, %s806_s8 }
 0x29d   : > { %p808_p11 = pnand %p807_p9, %p1283_p1 }
 0x29e   : > { %p813_p6 = por %p812_p8, %p811_p5 }
 0x29f   : > { %p809_p3 = pneg %p808_p11 }
 0x2a1   : > { %p814_p13 = pnand %p813_p6, %p809_p3 }
 0x2a3   : > { %817 = shalt.err (!%p814_p13)
}
 0x2a4   : > { %s871_s29 = smov 128   ;;  %s872_s6 = smov 8  }
 0x2a5   : > { %681 = dma.vmem_to_hbm [thread:$0]  (%p1283_p1), %s1223_s24, 384, %s1228_s28, %s517_s25, %s871_s29, %s871_s29, %s872_s6  }
 0x2a6 PF: > { %s545_s7 = sand.u32 1, %s848_s9   ;;  %p1284_p12 = scmp.ne.s32.totalorder %s1279_s21, 0 }
 0x2a7   : > { %p1285_p7 = scmp.ge.s32.totalorder %s860_s12, 2  ;;  %s546_s30 = scalar_lea.sflag [#allocation4], %s545_s7 }
 0x2a9   : > { %p691_p10 = pnand %p1285_p7, %p1284_p12 }
 0x2ab   : > { %p692_p0 = pneg %p691_p10 }
 0x2ad   : > { %843 = dma.done.wait (%p692_p0), %s546_s30, 384  }
 0x2ae   : > { %845 = vsyncadd (%p692_p0), %s546_s30, 4294966912  ;;  %p18_p2 = scmp.ge.s32.totalorder %s913_s15, 4   ;;  %s1286_s9 = smov %s852_s10 }
 0x2af   : > { %s1287_s10 = smov %s856_s11  ;;  %s1288_s11 = smov %s925_s18 }
 0x2b0   : > { %s1289_s12 = smov %s913_s15  ;;  %20 = sbr.rel (!%p18_p2) target bundleno = 7 (0x7), region = 99 }
 0x2b5   :  { %551 = vsyncpa [#allocation3], 1 }
 0x2b6   :  { %553 = vsyncpa [#allocation3 + $0x1], 1 }
 0x2b7   :  { %554 = vsyncpa [#allocation6], 1 }
 0x2b8   :  { %556 = vsyncpa [#allocation6 + $0x1], 1 }
 0x2b9   :  { %557 = vsyncpa [#allocation4], 1 }
 0x2ba   :  { %559 = vsyncpa [#allocation4 + $0x1], 1 }

</bundles_post_ra>
